<compile_context>
chip_gen: v7x
topology: tpu7x:2x2x1
jax: 0.10.0
libtpu: 0.0.40
codegen_flags: <defaults>
</compile_context>

<pallas_src>
import jax
import jax.numpy as jnp
from jax.experimental import pallas as pl
from jax.experimental.pallas import tpu as pltpu


def _round_up(x, m):
    return (x + m - 1) // m * m


def _largest_tile(n, target):
    """Largest multiple of 128 that divides n and is <= min(target, n)."""
    best = 128
    t = 128
    while t <= min(target, n):
        if n % t == 0:
            best = t
        t += 128
    return best


# ---------------------------------------------------------------------------
# Kernel 1: feature projection   XW = (X * norm_src) @ W   (bf16 output)
# ---------------------------------------------------------------------------
def proj_kernel(x_ref, ns_ref, w_ref, xw_ref):
    x_n = (x_ref[...] * ns_ref[...]).astype(jnp.bfloat16)      # (TM, Fin)
    xw_ref[...] = jnp.dot(x_n, w_ref[...],                      # bf16 x bf16 MXU
                          preferred_element_type=jnp.float32).astype(xw_ref.dtype)


# ---------------------------------------------------------------------------
# Kernel 2: tiled aggregation    Y = diag(norm_dst) @ (A @ XW) + b
#   grid = (dst tiles, src tiles); src is the reduction axis (last, arbitrary)
# ---------------------------------------------------------------------------
def _make_agg_kernel(xw_resident, tk, acc_into_out):
    def _xw_block(xw_ref, k):
        if xw_resident:
            # XW is fully VMEM-resident; slice the current reduction block.
            start = pl.multiple_of(k * tk, tk)
            return xw_ref[pl.ds(start, tk), :]
        return xw_ref[...]

    if acc_into_out:
        # f32 output: accumulate directly into the k-resident output block.
        def kernel(adj_ref, xw_ref, nd_ref, b_ref, o_ref):
            k = pl.program_id(1)

            @pl.when(k == 0)
            def _():
                o_ref[...] = jnp.zeros_like(o_ref)

            # bf16 x bf16 native MXU matmul with f32 accumulation.
            o_ref[...] += jnp.dot(adj_ref[...], _xw_block(xw_ref, k),
                                  preferred_element_type=jnp.float32)

            @pl.when(k == pl.num_programs(1) - 1)
            def _():
                o_ref[...] = o_ref[...] * nd_ref[...] + b_ref[...]
        return kernel

    # Narrow output dtype: keep an f32 scratch accumulator, cast once at the end.
    def kernel(adj_ref, xw_ref, nd_ref, b_ref, o_ref, acc_ref):
        k = pl.program_id(1)

        @pl.when(k == 0)
        def _():
            acc_ref[...] = jnp.zeros_like(acc_ref)

        acc_ref[...] += jnp.dot(adj_ref[...], _xw_block(xw_ref, k),
                                preferred_element_type=jnp.float32)

        @pl.when(k == pl.num_programs(1) - 1)
        def _():
            o_ref[...] = (acc_ref[...] * nd_ref[...] + b_ref[...]).astype(o_ref.dtype)
    return kernel


# ---------------------------------------------------------------------------
# Wrapper
# ---------------------------------------------------------------------------
def graph_conv(adj, feat, weight, bias, *, tm=256, tk=512):
    """adj: (N, N) dense adjacency A[dst, src]; feat: (N, Fin);
    weight: (Fin, Fout); bias: (Fout,).  Returns (N, Fout)."""
    N, Fin = feat.shape
    Fout = weight.shape[1]
    out_dtype = feat.dtype

    Fout_pad = _round_up(Fout, 128)          # lane-dense, unmasked output stores

    # ---- N padding / tile selection (avoid the 128x128 fallback) ----
    N_pad = _round_up(N, 128)
    if N_pad > 256 and _largest_tile(N_pad, tk) < 256:
        N_pad = _round_up(N, 256)            # small extra pad buys >=256-wide tiles
    TK = _largest_tile(N_pad, tk)
    TM = _largest_tile(N_pad, tm)            # dst axis; >=2 tiles feeds both v7x TCs
    kt = N_pad // TK

    # ---- global degree norms from the UNPADDED adjacency (no extra N^2 copy) ----
    out_deg = jnp.maximum(jnp.sum(adj, axis=0), 1.0)          # (N,) src out-degree
    in_deg = jnp.maximum(jnp.sum(adj, axis=1), 1.0)           # (N,) dst in-degree
    norm_src = jnp.pad(jax.lax.rsqrt(out_deg.astype(jnp.float32)),
                       (0, N_pad - N)).reshape(N_pad, 1)
    norm_dst = jnp.pad(jax.lax.rsqrt(in_deg.astype(jnp.float32)),
                       (0, N_pad - N)).reshape(N_pad, 1)

    # ---- single fused pad + cast of the adjacency to bf16 ({0,1} is exact) ----
    adj_bf16 = jnp.pad(adj.astype(jnp.bfloat16),
                       ((0, N_pad - N), (0, N_pad - N)))

    x_p = jnp.pad(feat.astype(jnp.float32), ((0, N_pad - N), (0, 0)))
    w_bf = jnp.pad(weight.astype(jnp.bfloat16), ((0, 0), (0, Fout_pad - Fout)))
    b_p = jnp.pad(bias.astype(jnp.float32), (0, Fout_pad - Fout)).reshape(1, Fout_pad)

    # ---- stage 1: XW = (X * norm_src) @ W  -> bf16 (halves the XW HBM stream) ----
    xw = pl.pallas_call(
        proj_kernel,
        out_shape=jax.ShapeDtypeStruct((N_pad, Fout_pad), jnp.bfloat16),
        grid=(N_pad // TM,),
        in_specs=[
            pl.BlockSpec((TM, Fin), lambda i: (i, 0)),
            pl.BlockSpec((TM, 1), lambda i: (i, 0)),
            pl.BlockSpec((Fin, Fout_pad), lambda i: (0, 0)),
        ],
        out_specs=pl.BlockSpec((TM, Fout_pad), lambda i: (i, 0)),
        compiler_params=pltpu.CompilerParams(dimension_semantics=("parallel",)),
    )(x_p, norm_src, w_bf)

    # ---- stage 2: Y = diag(norm_dst) @ (A @ XW) + b ----
    xw_resident = (N_pad * Fout_pad * 2) <= (8 << 20)     # single HBM read of XW
    acc_into_out = jnp.dtype(out_dtype) == jnp.dtype(jnp.float32)

    adj_buffers = 3 if kt >= 3 else 2
    if adj_buffers == 3:
        # Deeper buffering on the dominant N^2 stream to hide DMA jitter.
        adj_spec = pl.BlockSpec((TM, TK), lambda i, k: (i, k),
                                pipeline_mode=pl.Buffered(3))
    else:
        adj_spec = pl.BlockSpec((TM, TK), lambda i, k: (i, k))

    if xw_resident:
        xw_spec = pl.BlockSpec((N_pad, Fout_pad), lambda i, k: (0, 0))
    else:
        xw_spec = pl.BlockSpec((TK, Fout_pad), lambda i, k: (k, 0))

    scratch = [] if acc_into_out else [pltpu.VMEM((TM, Fout_pad), jnp.float32)]

    # VMEM budget (explicit limit only when above the conservative default,
    # capped below v7x's 64 MiB physical VMEM).
    out_item = jnp.dtype(out_dtype).itemsize
    vmem_est = (adj_buffers * TM * TK * 2
                + 2 * (N_pad if xw_resident else TK) * Fout_pad * 2
                + 2 * TM * Fout_pad * out_item
                + (0 if acc_into_out else TM * Fout_pad * 4)
                + (1 << 20))
    cp_kwargs = dict(dimension_semantics=("parallel", "arbitrary"))
    if vmem_est > (12 << 20):
        cp_kwargs["vmem_limit_bytes"] = int(min(vmem_est * 3 // 2, 60 << 20))

    out = pl.pallas_call(
        _make_agg_kernel(xw_resident, TK, acc_into_out),
        out_shape=jax.ShapeDtypeStruct((N_pad, Fout_pad), out_dtype),
        grid=(N_pad // TM, kt),
        in_specs=[
            adj_spec,                                         # A[dst, src] (bf16)
            xw_spec,                                          # XW (bf16)
            pl.BlockSpec((TM, 1), lambda i, k: (i, 0)),       # norm_dst
            pl.BlockSpec((1, Fout_pad), lambda i, k: (0, 0)), # bias
        ],
        out_specs=pl.BlockSpec((TM, Fout_pad), lambda i, k: (i, 0)),
        scratch_shapes=scratch,
        compiler_params=pltpu.CompilerParams(**cp_kwargs),
    )(adj_bf16, xw, norm_dst, b_p)

    return out[:N, :Fout]


# ---------------------------------------------------------------------------
# Pure-JAX reference mirroring the PyTorch forward (norm='both', default path)
# ---------------------------------------------------------------------------
def graph_conv_ref(adj, feat, weight, bias):
    out_deg = jnp.clip(jnp.sum(adj, axis=0), 1.0)        # (N,)
    in_deg = jnp.clip(jnp.sum(adj, axis=1), 1.0)         # (N,)
    feat_src = feat * jnp.power(out_deg, -0.5)[:, None]
    rst = adj @ feat_src
    rst = rst @ weight
    rst = rst * jnp.power(in_deg, -0.5)[:, None]
    return rst + bias[None, :]


def _make_case(key, N, in_feats, out_feats):
    k_adj, k_feat, k_w = jax.random.split(key, 3)
    # Random directed graph with self-loops (no 0-in-degree nodes, matching
    # the module's default _allow_zero_in_degree=False check).
    adj = (jax.random.uniform(k_adj, (N, N)) < 0.3).astype(jnp.float32)
    adj = jnp.maximum(adj, jnp.eye(N, dtype=jnp.float32))
    feat = jax.random.normal(k_feat, (N, in_feats), dtype=jnp.float32)
    # xavier_uniform_ weight, zero bias (reset_parameters()).
    a = (6.0 / (in_feats + out_feats)) ** 0.5
    weight = jax.random.uniform(k_w, (in_feats, out_feats),
                                dtype=jnp.float32, minval=-a, maxval=a)
    bias = jnp.zeros((out_feats,), dtype=jnp.float32)
    return adj, feat, weight, bias


if __name__ == "__main__":
    key = jax.random.PRNGKey(0)
    k1, k2, k3 = jax.random.split(key, 3)
    gc = jax.jit(graph_conv)   # fuses wrapper-side pad/cast/degree glue

    # Small cases consistent with the module's shapes; the third exercises the
    # multi-step reduction (grid (3, 2) after padding 640 -> 768).
    for (kk, N, Fin, Fout) in [(k1, 16, 32, 32), (k2, 300, 64, 48),
                               (k3, 640, 128, 256)]:
        adj, feat, weight, bias = _make_case(kk, N, Fin, Fout)
        out = jax.block_until_ready(gc(adj, feat, weight, bias))
        ref = graph_conv_ref(adj, feat, weight, bias)
        assert out.shape == (N, Fout)
        # bf16 XW / bf16 adjacency stream with f32 accumulation -> bf16-level
        # tolerance vs the pure-f32 reference.
        err = jnp.max(jnp.abs(out - ref))
        assert jnp.allclose(out, ref, atol=2e-2, rtol=2e-2), \
            f"mismatch vs reference for N={N}: max abs err {err}"

    # TODO(synk): edge_as_weight / attn / augment message paths (per-edge softmax
    # over a DGL edge list) are not exercised by the default forward and are not
    # implemented here.
    print("KERNEL_OK")
</pallas_src>

<mosaic_0001>
module attributes {stable_mosaic.version = 11 : i64} {
  func.func @proj_kernel(%arg0: i32, %arg1: memref<128x32xf32, #tpu.memory_space<vmem>>, %arg2: memref<128x1xf32, #tpu.memory_space<vmem>>, %arg3: memref<32x128xbf16, #tpu.memory_space<vmem>>, %arg4: memref<128x128xbf16, #tpu.memory_space<vmem>>) attributes {dimension_semantics = [#tpu.dimension_semantics<parallel>], iteration_bounds = array<i64: 1>, scalar_prefetch = 0 : i64, scratch_operands = 0 : i64, tpu.core_type = #tpu.core_type<tc>, window_params = [{transform_indices = @transform_0, window_bounds = array<i64: 128, 32>}, {transform_indices = @transform_1, window_bounds = array<i64: 128, 1>}, {pipeline_mode = #tpu.pipeline_mode<synchronous>, transform_indices = @transform_2, window_bounds = array<i64: 32, 128>}, {transform_indices = @transform_3, window_bounds = array<i64: 128, 128>}]} {
    %c0 = arith.constant 0 : index
    %c0_0 = arith.constant 0 : index
    %0 = vector.load %arg1[%c0, %c0_0] : memref<128x32xf32, #tpu.memory_space<vmem>>, vector<128x32xf32>
    %c0_1 = arith.constant 0 : index
    %c0_2 = arith.constant 0 : index
    %1 = vector.load %arg2[%c0_1, %c0_2] : memref<128x1xf32, #tpu.memory_space<vmem>>, vector<128x1xf32>
    %2 = vector.broadcast %1 : vector<128x1xf32> to vector<128x32xf32>
    %3 = arith.mulf %0, %2 : vector<128x32xf32>
    %4 = arith.truncf %3 : vector<128x32xf32> to vector<128x32xbf16>
    %c0_3 = arith.constant 0 : index
    %c0_4 = arith.constant 0 : index
    %5 = vector.load %arg3[%c0_3, %c0_4] : memref<32x128xbf16, #tpu.memory_space<vmem>>, vector<32x128xbf16>
    %cst = arith.constant dense<0.000000e+00> : vector<128x128xf32>
    %6 = tpu.matmul %4, %5, %cst {dimension_numbers = #tpu.dot_dimension_numbers<[1], [0], [0], [1], [0, 0, 1, 1], [], []>} : vector<128x32xbf16>, vector<32x128xbf16>, vector<128x128xf32> -> vector<128x128xf32>
    %7 = arith.truncf %6 : vector<128x128xf32> to vector<128x128xbf16>
    %c0_5 = arith.constant 0 : index
    %c0_6 = arith.constant 0 : index
    %8 = vector.load %arg4[%c0_5, %c0_6] : memref<128x128xbf16, #tpu.memory_space<vmem>>, vector<128x128xbf16>
    tpu.vector_store %arg4[%c0_5, %c0_6], %7 {strides = array<i32>} : memref<128x128xbf16, #tpu.memory_space<vmem>>, vector<128x128xbf16>,
    return
  }
  func.func @transform_0(%arg0: i32) -> (i32, i32) {
    %c0_i32 = arith.constant 0 : i32
    %c0_i32_0 = arith.constant 0 : i32
    return %arg0, %c0_i32 : i32, i32
  }
  func.func @transform_1(%arg0: i32) -> (i32, i32) {
    %c0_i32 = arith.constant 0 : i32
    %c0_i32_0 = arith.constant 0 : i32
    return %arg0, %c0_i32 : i32, i32
  }
  func.func @transform_2(%arg0: i32) -> (i32, i32) {
    %c0_i32 = arith.constant 0 : i32
    %c0_i32_0 = arith.constant 0 : i32
    %c0_i32_1 = arith.constant 0 : i32
    return %c0_i32, %c0_i32_0 : i32, i32
  }
  func.func @transform_3(%arg0: i32) -> (i32, i32) {
    %c0_i32 = arith.constant 0 : i32
    %c0_i32_0 = arith.constant 0 : i32
    return %arg0, %c0_i32 : i32, i32
  }
}

module attributes {stable_mosaic.version = 11 : i64} {
  func.func @kernel(%arg0: i32, %arg1: i32, %arg2: memref<128x128xbf16, #tpu.memory_space<vmem>>, %arg3: memref<128x128xbf16, #tpu.memory_space<vmem>>, %arg4: memref<128x1xf32, #tpu.memory_space<vmem>>, %arg5: memref<1x128xf32, #tpu.memory_space<vmem>>, %arg6: memref<128x128xf32, #tpu.memory_space<vmem>>) attributes {dimension_semantics = [#tpu.dimension_semantics<parallel>, #tpu.dimension_semantics<arbitrary>], iteration_bounds = array<i64: 1, 1>, scalar_prefetch = 0 : i64, scratch_operands = 0 : i64, tpu.core_type = #tpu.core_type<tc>, window_params = [{transform_indices = @transform_0, window_bounds = array<i64: 128, 128>}, {pipeline_mode = #tpu.pipeline_mode<synchronous>, transform_indices = @transform_1, window_bounds = array<i64: 128, 128>}, {transform_indices = @transform_2, window_bounds = array<i64: 128, 1>}, {pipeline_mode = #tpu.pipeline_mode<synchronous>, transform_indices = @transform_3, window_bounds = array<i64: 1, 128>}, {transform_indices = @transform_4, window_bounds = array<i64: 128, 128>}]} {
    %c0_i32 = arith.constant 0 : i32
    %0 = arith.cmpi eq, %arg1, %c0_i32 : i32
    %1 = arith.extui %0 : i1 to i32
    %c0_i32_0 = arith.constant 0 : i32
    %2 = arith.cmpi ne, %1, %c0_i32_0 : i32
    scf.if %2 {
      %cst_9 = arith.constant 0.000000e+00 : f32
      %15 = vector.broadcast %cst_9 : f32 to vector<128x128xf32>
      %c0_10 = arith.constant 0 : index
      %c0_11 = arith.constant 0 : index
      %16 = vector.load %arg6[%c0_10, %c0_11] : memref<128x128xf32, #tpu.memory_space<vmem>>, vector<128x128xf32>
      tpu.vector_store %arg6[%c0_10, %c0_11], %15 {strides = array<i32>} : memref<128x128xf32, #tpu.memory_space<vmem>>, vector<128x128xf32>,
    } else {
    }
    %c0 = arith.constant 0 : index
    %c0_1 = arith.constant 0 : index
    %3 = vector.load %arg6[%c0, %c0_1] : memref<128x128xf32, #tpu.memory_space<vmem>>, vector<128x128xf32>
    %c0_2 = arith.constant 0 : index
    %c0_3 = arith.constant 0 : index
    %4 = vector.load %arg2[%c0_2, %c0_3] : memref<128x128xbf16, #tpu.memory_space<vmem>>, vector<128x128xbf16>
    %c128_i32 = arith.constant 128 : i32
    %5 = arith.muli %arg1, %c128_i32 : i32
    %6 = tpu.assume_multiple %5, 128 : i32
    %7 = arith.index_cast %6 : i32 to index
    %c0_4 = arith.constant 0 : index
    %8 = vector.load %arg3[%7, %c0_4] : memref<128x128xbf16, #tpu.memory_space<vmem>>, vector<128x128xbf16>
    %cst = arith.constant dense<0.000000e+00> : vector<128x128xf32>
    %9 = tpu.matmul %4, %8, %cst {dimension_numbers = #tpu.dot_dimension_numbers<[1], [0], [0], [1], [0, 0, 1, 1], [], []>} : vector<128x128xbf16>, vector<128x128xbf16>, vector<128x128xf32> -> vector<128x128xf32>
    %10 = arith.addf %3, %9 : vector<128x128xf32>
    %c0_5 = arith.constant 0 : index
    %c0_6 = arith.constant 0 : index
    %11 = vector.load %arg6[%c0_5, %c0_6] : memref<128x128xf32, #tpu.memory_space<vmem>>, vector<128x128xf32>
    tpu.vector_store %arg6[%c0_5, %c0_6], %10 {strides = array<i32>} : memref<128x128xf32, #tpu.memory_space<vmem>>, vector<128x128xf32>,
    %c0_i32_7 = arith.constant 0 : i32
    %12 = arith.cmpi eq, %arg1, %c0_i32_7 : i32
    %13 = arith.extui %12 : i1 to i32
    %c0_i32_8 = arith.constant 0 : i32
    %14 = arith.cmpi ne, %13, %c0_i32_8 : i32
    scf.if %14 {
      %c0_9 = arith.constant 0 : index
      %c0_10 = arith.constant 0 : index
      %15 = vector.load %arg6[%c0_9, %c0_10] : memref<128x128xf32, #tpu.memory_space<vmem>>, vector<128x128xf32>
      %c0_11 = arith.constant 0 : index
      %c0_12 = arith.constant 0 : index
      %16 = vector.load %arg4[%c0_11, %c0_12] : memref<128x1xf32, #tpu.memory_space<vmem>>, vector<128x1xf32>
      %17 = vector.broadcast %16 : vector<128x1xf32> to vector<128x128xf32>
      %18 = arith.mulf %15, %17 : vector<128x128xf32>
      %c0_13 = arith.constant 0 : index
      %c0_14 = arith.constant 0 : index
      %19 = vector.load %arg5[%c0_13, %c0_14] : memref<1x128xf32, #tpu.memory_space<vmem>>, vector<1x128xf32>
      %20 = vector.broadcast %19 : vector<1x128xf32> to vector<128x128xf32>
      %21 = arith.addf %18, %20 : vector<128x128xf32>
      %c0_15 = arith.constant 0 : index
      %c0_16 = arith.constant 0 : index
      %22 = vector.load %arg6[%c0_15, %c0_16] : memref<128x128xf32, #tpu.memory_space<vmem>>, vector<128x128xf32>
      tpu.vector_store %arg6[%c0_15, %c0_16], %21 {strides = array<i32>} : memref<128x128xf32, #tpu.memory_space<vmem>>, vector<128x128xf32>,
    } else {
    }
    return
  }
  func.func @transform_0(%arg0: i32, %arg1: i32) -> (i32, i32) {
    %c0_i32 = arith.constant 0 : i32
    return %arg0, %arg1 : i32, i32
  }
  func.func @transform_1(%arg0: i32, %arg1: i32) -> (i32, i32) {
    %c0_i32 = arith.constant 0 : i32
    %c0_i32_0 = arith.constant 0 : i32
    %c0_i32_1 = arith.constant 0 : i32
    return %c0_i32, %c0_i32_0 : i32, i32
  }
  func.func @transform_2(%arg0: i32, %arg1: i32) -> (i32, i32) {
    %c0_i32 = arith.constant 0 : i32
    %c0_i32_0 = arith.constant 0 : i32
    return %arg0, %c0_i32 : i32, i32
  }
  func.func @transform_3(%arg0: i32, %arg1: i32) -> (i32, i32) {
    %c0_i32 = arith.constant 0 : i32
    %c0_i32_0 = arith.constant 0 : i32
    %c0_i32_1 = arith.constant 0 : i32
    return %c0_i32, %c0_i32_0 : i32, i32
  }
  func.func @transform_4(%arg0: i32, %arg1: i32) -> (i32, i32) {
    %c0_i32 = arith.constant 0 : i32
    %c0_i32_0 = arith.constant 0 : i32
    return %arg0, %c0_i32 : i32, i32
  }
}

</mosaic_0001>

<bundles_post_ra>
// kernel: graph_conv.2
= control target key start
LH: loop header
LB: loop body
LE: loop exit
PB: predicated region body
PF: predicated region fallthrough
CT: control target
= control target key end

     0   :  { %v501_v0 = vmov 0   ;;  %vm167_vm0 = vcmask 261120   ;;  %s656_s1 = inlined_call_operand.vmem [shape: f32[128,1], index: 1, kind: input, shape index: {}]   ;;  %s657_s2 = inlined_call_operand.vmem [shape: bf16[32,128], index: 2, kind: input, shape index: {}]   ;;  %s658_s0 = inlined_call_operand.vmem [shape: f32[128,32], index: 0, kind: input, shape index: {}]   ;;  %s659_s3 = inlined_call_operand.vmem [shape: bf16[128,128], index: 3, kind: output, shape index: {}]  }
   0x1   :  { %498 = vset.pattern.permute.xlu1 %v501_v0  ;;  %497 = vset.pattern.permute.xlu0 %v501_v0  ;;  %v39_v1 = vld [vmem:[%s656_s1 + $0x40] sm:$0xff]  ;;  %v40_v3 = vld [vmem:[%s656_s1 + $0x48] sm:$0xff]  ;;  %v34_v5 = vld [vmem:[%s656_s1 + $0x18] sm:$0xff] }
   0x2   :  { %v31_v2 = vld [vmem:[%s656_s1] sm:$0xff]  ;;  %89 = vperm.xlu1 %498, %v39_v1   ;;  %v32_v4 = vld [vmem:[%s656_s1 + $0x8] sm:$0xff]  ;;  %v33_v6 = vld [vmem:[%s656_s1 + $0x10] sm:$0xff] }
   0x3   :  { %49 = vperm.xlu0 %497, %v31_v2   ;;  %v499_v7 = vld [vmem:[%s657_s2] sm:$0xff]   ;;  %v500_v8 = vld [vmem:[%s657_s2 + $0x8] sm:$0xff]   ;;  %v42_v9 = vld [vmem:[%s656_s1 + $0x58] sm:$0xff] }
   0x4   :  { %v41_v10 = vld [vmem:[%s656_s1 + $0x50] sm:$0xff]  ;;  %472 = vmatprep.subr.bf16.mxu0 %v499_v7  ;;  %492 = vmatprep.subr.bf16.mxu1 %v499_v7  ;;  %v36_v11 = vld [vmem:[%s656_s1 + $0x28] sm:$0xff]  ;;  %v35_v12 = vld [vmem:[%s656_s1 + $0x20] sm:$0xff] }
   0x5   :  { %473 = vmatpush3.bf16.msra.mxu0 %v499_v7  ;;  %494 = vmatpush3.bf16.msra.mxu1 %v499_v7  ;;  %v44_v13 = vld [vmem:[%s656_s1 + $0x68] sm:$0xff]  ;;  %v43_v14 = vld [vmem:[%s656_s1 + $0x60] sm:$0xff]  ;;  %v38_v15 = vld [vmem:[%s656_s1 + $0x38] sm:$0xff] }
   0x6   :  { %94 = vperm.xlu1 %498, %v40_v3   ;;  %474 = vmatprep.subr.bf16.mxu0 %v500_v8  ;;  %v37_v16 = vld [vmem:[%s656_s1 + $0x30] sm:$0xff]  ;;  %v46_v17 = vld [vmem:[%s656_s1 + $0x78] sm:$0xff]  ;;  %v23_v21 = vld [vmem:[%s658_s0 + $0x40] sm:$0xff] }
   0x7   :  { %54 = vperm.xlu0 %497, %v32_v4   ;;  %493 = vmatprep.subr.bf16.mxu1 %v500_v8  ;;  %v45_v18 = vld [vmem:[%s656_s1 + $0x70] sm:$0xff]  ;;  %v15_v22 = vld [vmem:[%s658_s0] sm:$0xff]  ;;  %v24_v23 = vld [vmem:[%s658_s0 + $0x48] sm:$0xff] }
   0x8   :  { %v16_v24 = vld [vmem:[%s658_s0 + $0x8] sm:$0xff]  ;;  %v18_v31 = vld [vmem:[%s658_s0 + $0x18] sm:$0xff]  ;;  %v17_v32 = vld [vmem:[%s658_s0 + $0x10] sm:$0xff] }
   0x9   :  { %475 = vmatpush3.bf16.msra.mxu0 %v500_v8  ;;  %495 = vmatpush3.bf16.msra.mxu1 %v500_v8  ;;  %v26_v39 = vld [vmem:[%s658_s0 + $0x58] sm:$0xff]  ;;  %v25_v40 = vld [vmem:[%s658_s0 + $0x50] sm:$0xff]  ;;  %v20_v46 = vld [vmem:[%s658_s0 + $0x28] sm:$0xff] }
   0xa   :  { %64 = vperm.xlu1 %498, %v34_v5   ;;  %v19_v47 = vld [vmem:[%s658_s0 + $0x20] sm:$0xff]  ;;  %v28_v53 = vld [vmem:[%s658_s0 + $0x68] sm:$0xff]  ;;  %v22_v60 = vld [vmem:[%s658_s0 + $0x38] sm:$0xff] }
   0xb   :  { %59 = vperm.xlu0 %497, %v33_v6   ;;  %v27_v54 = vld [vmem:[%s658_s0 + $0x60] sm:$0xff]  ;;  %v21_v61 = vld [vmem:[%s658_s0 + $0x30] sm:$0xff]  ;;  %v30_v3 = vld [vmem:[%s658_s0 + $0x78] sm:$0xff] }
   0xc   :  { %v29_v4 = vld [vmem:[%s658_s0 + $0x70] sm:$0xff] }
   0xe   :  { %104 = vperm.xlu1 %498, %v42_v9  }
   0xf   :  { %99 = vperm.xlu0 %497, %v41_v10  }
  0x12   :  { %74 = vperm.xlu1 %498, %v36_v11  }
  0x13   :  { %69 = vperm.xlu0 %497, %v35_v12  }
  0x16   :  { %114 = vperm.xlu1 %498, %v44_v13  }
  0x17   :  { %109 = vperm.xlu0 %497, %v43_v14  }
  0x1a   :  { %84 = vperm.xlu1 %498, %v38_v15  }
  0x1b   :  { %79 = vperm.xlu0 %497, %v37_v16  }
  0x1e   :  { %124 = vperm.xlu1 %498, %v46_v17  }
  0x1f   :  { %119 = vperm.xlu0 %497, %v45_v18  }
  0x81   :  { %v90_v19 = vpop.permute.xlu1 %89 }
  0x82   :  { %v50_v20 = vpop.permute.xlu0 %49  ;;  %v135_v27 = vmul.f32 %v90_v19, %v23_v21 }
  0x83   :  { %v127_v28 = vmul.f32 %v50_v20, %v15_v22 }
  0x85   :  { %v95_v25 = vpop.permute.xlu1 %94 }
  0x86   :  { %v55_v26 = vpop.permute.xlu0 %54  ;;  %v136_v29 = vmul.f32 %v95_v25, %v24_v23 }
  0x87   :  { %v128_v30 = vmul.f32 %v55_v26, %v16_v24 }
  0x88   :  { %v147_v34 = vpack.c.bf16 %v136_v29, %v135_v27 }
  0x89   :  { %v143_v33 = vpack.c.bf16 %v128_v30, %v127_v28  ;;  %v65_v35 = vpop.permute.xlu1 %64 }
  0x8a   :  { %v60_v36 = vpop.permute.xlu0 %59  ;;  %v130_v37 = vmul.f32 %v65_v35, %v18_v31  ;;  %484 = vmatprep.mubr.msk.bf16.mxu1 %vm167_vm0, %v147_v34 }
  0x8b   :  { %v129_v38 = vmul.f32 %v60_v36, %v17_v32  ;;  %476 = vmatprep.mubr.msk.bf16.mxu0 %vm167_vm0, %v143_v33 }
  0x8d   :  { %v144_v41 = vpack.c.bf16 %v130_v37, %v129_v38  ;;  %v105_v42 = vpop.permute.xlu1 %104 }
  0x8e   :  { %v100_v43 = vpop.permute.xlu0 %99  ;;  %v138_v44 = vmul.f32 %v105_v42, %v26_v39 }
  0x8f   :  { %v137_v45 = vmul.f32 %v100_v43, %v25_v40  ;;  %477 = vmatmul.mubr.msk.bf16.vlgmr.msra.gmra.mrb[0].mxu0 %vm167_vm0, %v144_v41 }
  0x91   :  { %v148_v48 = vpack.c.bf16 %v138_v44, %v137_v45  ;;  %v75_v49 = vpop.permute.xlu1 %74 }
  0x92   :  { %v70_v50 = vpop.permute.xlu0 %69  ;;  %v132_v51 = vmul.f32 %v75_v49, %v20_v46 }
  0x93   :  { %v131_v52 = vmul.f32 %v70_v50, %v19_v47  ;;  %485 = vmatmul.mubr.msk.bf16.vlgmr.msra.gmra.mrb[0].mxu1 %vm167_vm0, %v148_v48 }
  0x95   :  { %v145_v55 = vpack.c.bf16 %v132_v51, %v131_v52  ;;  %v115_v56 = vpop.permute.xlu1 %114 }
  0x96   :  { %v110_v57 = vpop.permute.xlu0 %109  ;;  %v140_v58 = vmul.f32 %v115_v56, %v28_v53 }
  0x97   :  { %v139_v59 = vmul.f32 %v110_v57, %v27_v54  ;;  %480 = vmatprep.mubr.msk.bf16.mxu0 %vm167_vm0, %v145_v55 }
  0x99   :  { %v149_v62 = vpack.c.bf16 %v140_v58, %v139_v59  ;;  %v85_v63 = vpop.permute.xlu1 %84 }
  0x9a   :  { %v80_v0 = vpop.permute.xlu0 %79  ;;  %v134_v1 = vmul.f32 %v85_v63, %v22_v60 }
  0x9b   :  { %v133_v2 = vmul.f32 %v80_v0, %v21_v61  ;;  %488 = vmatprep.mubr.msk.bf16.mxu1 %vm167_vm0, %v149_v62 }
  0x9d   :  { %v146_v5 = vpack.c.bf16 %v134_v1, %v133_v2  ;;  %v125_v6 = vpop.permute.xlu1 %124 }
  0x9e   :  { %v120_v7 = vpop.permute.xlu0 %119  ;;  %v142_v8 = vmul.f32 %v125_v6, %v30_v3 }
  0x9f   :  { %v141_v9 = vmul.f32 %v120_v7, %v29_v4  ;;  %481 = vmatmul.mubr.msk.bf16.gmra.mrb[4].mxu0 %vm167_vm0, %v146_v5 }
  0xa1   :  { %v150_v10 = vpack.c.bf16 %v142_v8, %v141_v9 }
  0xa3   :  { %489 = vmatmul.mubr.msk.bf16.gmra.mrb[4].mxu1 %vm167_vm0, %v150_v10 }
 0x162   :  { %v478_v11 = vpop.f32.mrb[0].mxu0 }
 0x163   :  { %v226_v12 = vpop.f32.mrb[1].mxu0 }
 0x164   :  { %v479_v13 = vpop.f32.mrb[2].mxu0 }
 0x165   :  { %v423_v14 = vpack.c.bf16 %v479_v13, %v478_v11  ;;  %v229_v15 = vpop.f32.mrb[3].mxu0 }
 0x166   :  { %v418_v16 = vpack.c.bf16 %v229_v15, %v226_v12  ;;  %v486_v17 = vpop.f32.mrb[0].mxu1 }
 0x167   :  { %455 = vst [vmem:[%s659_s3 + $0x8] sm:$0xff] %v423_v14   ;;  %v258_v18 = vpop.f32.mrb[1].mxu1 }
 0x168   :  { %419 = vst [vmem:[%s659_s3] sm:$0xff] %v418_v16   ;;  %v487_v19 = vpop.f32.mrb[2].mxu1 }
 0x169   :  { %v443_v20 = vpack.c.bf16 %v487_v19, %v486_v17  ;;  %v261_v21 = vpop.f32.mrb[3].mxu1 }
 0x16a   :  { %v438_v22 = vpack.c.bf16 %v261_v21, %v258_v18 }
 0x16b   :  { %459 = vst [vmem:[%s659_s3 + $0x28] sm:$0xff] %v443_v20  }
 0x16c   :  { %458 = vst [vmem:[%s659_s3 + $0x20] sm:$0xff] %v438_v22  }
 0x172   :  { %v482_v23 = vpop.f32.mrb[4].mxu0 }
 0x173   :  { %v242_v24 = vpop.f32.mrb[5].mxu0 }
 0x174   :  { %v483_v25 = vpop.f32.mrb[6].mxu0 }
 0x175   :  { %v433_v26 = vpack.c.bf16 %v483_v25, %v482_v23  ;;  %v245_v27 = vpop.f32.mrb[7].mxu0 }
 0x176   :  { %v428_v28 = vpack.c.bf16 %v245_v27, %v242_v24  ;;  %v490_v29 = vpop.f32.mrb[4].mxu1 }
 0x177   :  { %457 = vst [vmem:[%s659_s3 + $0x18] sm:$0xff] %v433_v26   ;;  %v274_v30 = vpop.f32.mrb[5].mxu1 }
 0x178   :  { %456 = vst [vmem:[%s659_s3 + $0x10] sm:$0xff] %v428_v28   ;;  %v491_v31 = vpop.f32.mrb[6].mxu1 }
 0x179   :  { %v453_v32 = vpack.c.bf16 %v491_v31, %v490_v29  ;;  %v277_v33 = vpop.f32.mrb[7].mxu1 }
 0x17a   :  { %v448_v34 = vpack.c.bf16 %v277_v33, %v274_v30 }
 0x17b   :  { %461 = vst [vmem:[%s659_s3 + $0x38] sm:$0xff] %v453_v32  }
 0x17c   :  { %460 = vst [vmem:[%s659_s3 + $0x30] sm:$0xff] %v448_v34  }

// kernel: graph_conv.3
= control target key start
LH: loop header
LB: loop body
LE: loop exit
PB: predicated region body
PF: predicated region fallthrough
CT: control target
= control target key end

     0   :  { %v593_v1 = vmov 0   ;;  %s769_s1 = inlined_call_operand.vmem [shape: bf16[128,128], index: 1, kind: input, shape index: {}]   ;;  %s770_s0 = inlined_call_operand.vmem [shape: bf16[128,128], index: 0, kind: input, shape index: {}]   ;;  %s771_s2 = inlined_call_operand.vmem [shape: f32[128,1], index: 2, kind: input, shape index: {}]   ;;  %s772_s3 = inlined_call_operand.vmem [shape: f32[1,128], index: 3, kind: input, shape index: {}]   ;;  %s773_s4 = inlined_call_operand.vmem [shape: f32[128,128], index: 4, kind: output, shape index: {}]  }
   0x1   :  { %v577_v0 = vld [vmem:[%s769_s1] sm:$0xff]   ;;  %576 = vset.pattern.permute.xlu1 %v593_v1  ;;  %575 = vset.pattern.permute.xlu0 %v593_v1  ;;  %v578_v2 = vld [vmem:[%s769_s1 + $0x8] sm:$0xff]   ;;  %v579_v3 = vld [vmem:[%s769_s1 + $0x10] sm:$0xff]  }
   0x2   :  { %525 = vmatprep.subr.bf16.mxu0 %v577_v0  ;;  %557 = vmatprep.subr.bf16.mxu1 %v577_v0  ;;  %v580_v4 = vld [vmem:[%s769_s1 + $0x18] sm:$0xff]   ;;  %v585_v5 = vld [vmem:[%s770_s0] sm:$0xff]   ;;  %v582_v8 = vld [vmem:[%s769_s1 + $0x28] sm:$0xff]  }
   0x3   :  { %526 = vmatpush3.bf16.msra.mxu0 %v577_v0  ;;  %565 = vmatpush3.bf16.msra.mxu1 %v577_v0  ;;  %v586_v6 = vld [vmem:[%s770_s0 + $0x20] sm:$0xff]   ;;  %v337_v9 = vld [vmem:[%s771_s2 + $0x10] sm:$0xff]  ;;  %v338_v11 = vld [vmem:[%s771_s2 + $0x18] sm:$0xff] }
   0x4   :  { %527 = vmatprep.subr.bf16.mxu0 %v578_v2  ;;  %558 = vmatprep.subr.bf16.mxu1 %v578_v2  ;;  %v581_v7 = vld [vmem:[%s769_s1 + $0x20] sm:$0xff]   ;;  %v336_v12 = vld [vmem:[%s771_s2 + $0x8] sm:$0xff]  ;;  %v583_v13 = vld [vmem:[%s769_s1 + $0x30] sm:$0xff]  }
   0x5   :  { %541 = vmatprep.mubr.bf16.mxu0 %v585_v5  ;;  %549 = vmatprep.mubr.bf16.mxu1 %v586_v6  ;;  %v335_v10 = vld [vmem:[%s771_s2] sm:$0xff]  ;;  %v340_v14 = vld [vmem:[%s771_s2 + $0x28] sm:$0xff]  ;;  %v584_v16 = vld [vmem:[%s769_s1 + $0x38] sm:$0xff]  }
   0x6   :  { %363 = vperm.xlu1 %576, %v337_v9   ;;  %353 = vperm.xlu0 %575, %v335_v10   ;;  %v339_v15 = vld [vmem:[%s771_s2 + $0x20] sm:$0xff]  ;;  %v342_v17 = vld [vmem:[%s771_s2 + $0x38] sm:$0xff]  ;;  %v341_v18 = vld [vmem:[%s771_s2 + $0x30] sm:$0xff] }
   0x7   :  { %528 = vmatpush3.bf16.msra.mxu0 %v578_v2  ;;  %566 = vmatpush3.bf16.msra.mxu1 %v578_v2  ;;  %v587_v19 = vld [vmem:[%s770_s0 + $0x8] sm:$0xff]   ;;  %v343_v22 = vld [vmem:[%s771_s2 + $0x40] sm:$0xff]  ;;  %v589_v23 = vld [vmem:[%s770_s0 + $0x10] sm:$0xff]  }
   0x8   :  { %529 = vmatprep.subr.bf16.mxu0 %v579_v3  ;;  %559 = vmatprep.subr.bf16.mxu1 %v579_v3  ;;  %v588_v20 = vld [vmem:[%s770_s0 + $0x28] sm:$0xff]   ;;  %v590_v24 = vld [vmem:[%s770_s0 + $0x30] sm:$0xff]   ;;  %v346_v25 = vld [vmem:[%s771_s2 + $0x58] sm:$0xff] }
   0x9   :  { %v344_v21 = vld [vmem:[%s771_s2 + $0x48] sm:$0xff]  ;;  %v345_v26 = vld [vmem:[%s771_s2 + $0x50] sm:$0xff]  ;;  %v591_v27 = vld [vmem:[%s770_s0 + $0x18] sm:$0xff]  }
   0xa   :  { %368 = vperm.xlu1 %576, %v338_v11   ;;  %358 = vperm.xlu0 %575, %v336_v12   ;;  %v592_v28 = vld [vmem:[%s770_s0 + $0x38] sm:$0xff]   ;;  %v348_v29 = vld [vmem:[%s771_s2 + $0x68] sm:$0xff]  ;;  %v347_v30 = vld [vmem:[%s771_s2 + $0x60] sm:$0xff] }
   0xb   :  { %530 = vmatpush3.bf16.msra.mxu0 %v579_v3  ;;  %567 = vmatpush3.bf16.msra.mxu1 %v579_v3  ;;  %v350_v31 = vld [vmem:[%s771_s2 + $0x78] sm:$0xff]  ;;  %v349_v32 = vld [vmem:[%s771_s2 + $0x70] sm:$0xff]  ;;  %v508_v50 = vld [vmem:[%s772_s3] ss:$0 sm:$0xff] }
   0xc   :  { %531 = vmatprep.subr.bf16.mxu0 %v580_v4  ;;  %560 = vmatprep.subr.bf16.mxu1 %v580_v4 }
   0xe   :  { %378 = vperm.xlu1 %576, %v340_v14   ;;  %373 = vperm.xlu0 %575, %v339_v15  }
   0xf   :  { %532 = vmatpush3.bf16.msra.mxu0 %v580_v4  ;;  %568 = vmatpush3.bf16.msra.mxu1 %v580_v4 }
  0x10   :  { %533 = vmatprep.subr.bf16.mxu0 %v581_v7  ;;  %561 = vmatprep.subr.bf16.mxu1 %v581_v7 }
  0x12   :  { %388 = vperm.xlu1 %576, %v342_v17   ;;  %383 = vperm.xlu0 %575, %v341_v18  }
  0x13   :  { %534 = vmatpush3.bf16.msra.mxu0 %v581_v7  ;;  %569 = vmatpush3.bf16.msra.mxu1 %v581_v7 }
  0x14   :  { %535 = vmatprep.subr.bf16.mxu0 %v582_v8  ;;  %562 = vmatprep.subr.bf16.mxu1 %v582_v8 }
  0x16   :  { %398 = vperm.xlu1 %576, %v344_v21   ;;  %393 = vperm.xlu0 %575, %v343_v22  }
  0x17   :  { %536 = vmatpush3.bf16.msra.mxu0 %v582_v8  ;;  %570 = vmatpush3.bf16.msra.mxu1 %v582_v8 }
  0x18   :  { %537 = vmatprep.subr.bf16.mxu0 %v583_v13  ;;  %563 = vmatprep.subr.bf16.mxu1 %v583_v13 }
  0x1a   :  { %408 = vperm.xlu1 %576, %v346_v25   ;;  %403 = vperm.xlu0 %575, %v345_v26  }
  0x1b   :  { %538 = vmatpush3.bf16.msra.mxu0 %v583_v13  ;;  %571 = vmatpush3.bf16.msra.mxu1 %v583_v13 }
  0x1c   :  { %539 = vmatprep.subr.bf16.mxu0 %v584_v16  ;;  %564 = vmatprep.subr.bf16.mxu1 %v584_v16 }
  0x1e   :  { %418 = vperm.xlu1 %576, %v348_v29   ;;  %413 = vperm.xlu0 %575, %v347_v30  }
  0x1f   :  { %540 = vmatpush3.bf16.msra.mxu0 %v584_v16  ;;  %572 = vmatpush3.bf16.msra.mxu1 %v584_v16 }
  0x22   :  { %542 = vmatmul.mubr.bf16.vlgmr.msra.gmra.mrb[0].mxu0 %v587_v19  ;;  %550 = vmatmul.mubr.bf16.vlgmr.msra.gmra.mrb[0].mxu1 %v588_v20 }
  0x23   :  { %545 = vmatprep.mubr.bf16.mxu0 %v589_v23  ;;  %553 = vmatprep.mubr.bf16.mxu1 %v590_v24 }
  0x24   :  { %428 = vperm.xlu1 %576, %v350_v31   ;;  %423 = vperm.xlu0 %575, %v349_v32  }
  0x2a   :  { %546 = vmatmul.mubr.bf16.gmra.mrb[4].mxu0 %v591_v27  ;;  %554 = vmatmul.mubr.bf16.gmra.mrb[4].mxu1 %v592_v28 }
  0x85   :  { %v354_v33 = vpop.permute.xlu0 %353  ;;  %v364_v34 = vpop.permute.xlu1 %363 }
  0x89   :  { %v359_v35 = vpop.permute.xlu0 %358  ;;  %v369_v36 = vpop.permute.xlu1 %368 }
  0x8d   :  { %v374_v37 = vpop.permute.xlu0 %373  ;;  %v715_v38 = vpop.permute.xlu1 %378 }
  0x91   :  { %v384_v39 = vpop.permute.xlu0 %383  ;;  %v389_v40 = vpop.permute.xlu1 %388 }
  0x95   :  { %v394_v41 = vpop.permute.xlu0 %393  ;;  %v399_v42 = vpop.permute.xlu1 %398 }
  0x99   :  { %v404_v43 = vpop.permute.xlu0 %403  ;;  %v409_v44 = vpop.permute.xlu1 %408 }
  0x9d   :  { %v414_v45 = vpop.permute.xlu0 %413  ;;  %v419_v63 = vpop.permute.xlu1 %418 }
  0xa3   :  { %v424_v4 = vpop.permute.xlu0 %423  ;;  %v429_v19 = vpop.permute.xlu1 %428 }
  0xf5   :  { %v543_v46 = vpop.f32.mrb[0].mxu0  ;;  %v551_v47 = vpop.f32.mrb[0].mxu1 }
  0xf6   :  { %v221_v48 = vpop.f32.mrb[1].mxu0  ;;  %v253_v49 = vpop.f32.mrb[1].mxu1  ;;  %v433_v53 = vmul.f32 %v543_v46, %v364_v34  ;;  %v441_v54 = vmul.f32 %v551_v47, %v404_v43 }
  0xf7   :  { %v544_v51 = vpop.f32.mrb[2].mxu0  ;;  %v552_v52 = vpop.f32.mrb[2].mxu1  ;;  %v431_v57 = vmul.f32 %v354_v33, %v221_v48  ;;  %v439_v58 = vmul.f32 %v394_v41, %v253_v49 }
  0xf8   :  { %v224_v55 = vpop.f32.mrb[3].mxu0  ;;  %v256_v56 = vpop.f32.mrb[3].mxu1  ;;  %v456_v59 = vadd.f32 %v508_v50, %v433_v53  ;;  %v464_v60 = vadd.f32 %v508_v50, %v441_v54  ;;  %v434_v61 = vmul.f32 %v544_v51, %v369_v36  ;;  %v442_v62 = vmul.f32 %v552_v52, %v409_v44 }
  0xf9   :  { %v454_v0 = vadd.f32 %v508_v50, %v431_v57  ;;  %v462_v1 = vadd.f32 %v508_v50, %v439_v58  ;;  %v432_v2 = vmul.f32 %v359_v35, %v224_v55  ;;  %v440_v3 = vmul.f32 %v399_v42, %v256_v56 }
  0xfa   :  { %472 = vst [vmem:[%s773_s4 + $0x10] sm:$0xff] %v456_v59  ;;  %480 = vst [vmem:[%s773_s4 + $0x50] sm:$0xff] %v464_v60  ;;  %v457_v5 = vadd.f32 %v508_v50, %v434_v61  ;;  %v465_v6 = vadd.f32 %v508_v50, %v442_v62 }
  0xfb   :  { %470 = vst [vmem:[%s773_s4] sm:$0xff] %v454_v0  ;;  %478 = vst [vmem:[%s773_s4 + $0x40] sm:$0xff] %v462_v1  ;;  %v455_v7 = vadd.f32 %v508_v50, %v432_v2  ;;  %v463_v8 = vadd.f32 %v508_v50, %v440_v3 }
  0xfc   :  { %473 = vst [vmem:[%s773_s4 + $0x18] sm:$0xff] %v457_v5  ;;  %481 = vst [vmem:[%s773_s4 + $0x58] sm:$0xff] %v465_v6 }
  0xfd   :  { %v547_v9 = vpop.f32.mrb[4].mxu0  ;;  %v555_v10 = vpop.f32.mrb[4].mxu1  ;;  %471 = vst [vmem:[%s773_s4 + $0x8] sm:$0xff] %v455_v7  ;;  %479 = vst [vmem:[%s773_s4 + $0x48] sm:$0xff] %v463_v8 }
  0xfe   :  { %v237_v11 = vpop.f32.mrb[5].mxu0  ;;  %v269_v12 = vpop.f32.mrb[5].mxu1  ;;  %v437_v15 = vmul.f32 %v547_v9, %v384_v39  ;;  %v445_v16 = vmul.f32 %v555_v10, %v424_v4 }
  0xff   :  { %v548_v13 = vpop.f32.mrb[6].mxu0  ;;  %v556_v14 = vpop.f32.mrb[6].mxu1  ;;  %v435_v20 = vmul.f32 %v374_v37, %v237_v11  ;;  %v443_v21 = vmul.f32 %v414_v45, %v269_v12 }
 0x100   :  { %v240_v17 = vpop.f32.mrb[7].mxu0  ;;  %v272_v18 = vpop.f32.mrb[7].mxu1  ;;  %v460_v22 = vadd.f32 %v508_v50, %v437_v15  ;;  %v468_v23 = vadd.f32 %v508_v50, %v445_v16  ;;  %v438_v24 = vmul.f32 %v548_v13, %v389_v40  ;;  %v446_v25 = vmul.f32 %v556_v14, %v429_v19 }
 0x101   :  { %v458_v26 = vadd.f32 %v508_v50, %v435_v20  ;;  %v466_v27 = vadd.f32 %v508_v50, %v443_v21  ;;  %v436_v28 = vmul.f32 %v715_v38, %v240_v17  ;;  %v444_v29 = vmul.f32 %v419_v63, %v272_v18 }
 0x102   :  { %476 = vst [vmem:[%s773_s4 + $0x30] sm:$0xff] %v460_v22  ;;  %484 = vst [vmem:[%s773_s4 + $0x70] sm:$0xff] %v468_v23  ;;  %v461_v30 = vadd.f32 %v508_v50, %v438_v24  ;;  %v469_v31 = vadd.f32 %v508_v50, %v446_v25 }
 0x103   :  { %474 = vst [vmem:[%s773_s4 + $0x20] sm:$0xff] %v458_v26  ;;  %482 = vst [vmem:[%s773_s4 + $0x60] sm:$0xff] %v466_v27  ;;  %v459_v32 = vadd.f32 %v508_v50, %v436_v28  ;;  %v467_v33 = vadd.f32 %v508_v50, %v444_v29 }
 0x104   :  { %477 = vst [vmem:[%s773_s4 + $0x38] sm:$0xff] %v461_v30  ;;  %485 = vst [vmem:[%s773_s4 + $0x78] sm:$0xff] %v469_v31 }
 0x105   :  { %475 = vst [vmem:[%s773_s4 + $0x28] sm:$0xff] %v459_v32  ;;  %483 = vst [vmem:[%s773_s4 + $0x68] sm:$0xff] %v467_v33 }

</bundles_post_ra>
